<compile_context>
chip_gen: v5e
topology: v5e:2x2
jax: 0.10.0
libtpu: 0.0.40
codegen_flags: <defaults>
</compile_context>

<pallas_src>
import functools

import jax
import jax.numpy as jnp
from jax.experimental import pallas as pl
from jax.experimental.pallas import tpu as pltpu


def _round_up(x: int, m: int) -> int:
    return ((x + m - 1) // m) * m


def _encoder_norm_kernel(x_ref, alpha_ref, bias_ref, o_ref, *, eps: float,
                         f_valid: int):
    # x_ref: (row_tile, f_pad); alpha_ref/bias_ref: (1, f_pad)
    x = x_ref[...].astype(jnp.float32)
    f_pad = x.shape[-1]

    # Padded lanes (if any) are zero-filled by the wrapper, so the plain sum
    # is already the sum over the valid features.
    mean = jnp.sum(x, axis=-1, keepdims=True) * (1.0 / f_valid)
    centered = x - mean

    if f_pad != f_valid:
        # Mask the padded lanes out of the variance (they hold -mean here).
        lane = jax.lax.broadcasted_iota(jnp.int32, centered.shape,
                                        dimension=centered.ndim - 1)
        centered_sq = jnp.where(lane < f_valid, centered * centered, 0.0)
    else:
        centered_sq = centered * centered

    # torch std(dim=-1) default is unbiased (ddof = 1).
    var = jnp.sum(centered_sq, axis=-1, keepdims=True) * (1.0 / (f_valid - 1))
    std = jnp.sqrt(var)

    # EUP reciprocal instead of a VALU divide; approx=False keeps us inside
    # the 1e-5 tolerance against the f32 reference.
    inv = pl.reciprocal(std + eps, approx=False)

    alpha = alpha_ref[...].astype(jnp.float32)
    bias = bias_ref[...].astype(jnp.float32)

    y = centered * (alpha * inv) + bias
    o_ref[...] = y.astype(o_ref.dtype)


def encoder_forward(x, mask, alpha, bias, *, eps: float = 1e-6,
                    row_tile: int | None = None,
                    vmem_limit_bytes: int = 32 * 1024 * 1024):
    """Encoder forward: (no layers) -> final LayerNormalization via Pallas.

    x: (batch, seq, features); mask is accepted for API parity (unused
    because the layer list is empty).
    """
    del mask
    b, s, f = x.shape
    assert f >= 2, "LayerNormalization with unbiased std requires features >= 2"
    rows = b * s

    itemsize = jnp.dtype(x.dtype).itemsize
    # Sublane packing multiple: 8 for f32, 16 for bf16, etc.
    sub = max(8, 32 // itemsize)
    # Lane-dense feature axis (multiple of 128 lanes).
    f_pad = _round_up(f, 128)

    if row_tile is None:
        # Conservative pipeline-buffer budget (~16 MiB) so the kernel fits the
        # default scoped VMEM on v7x (32 MiB of 64 MiB physical) with headroom
        # for f32 temporaries; vmem_limit_bytes=32 MiB also covers v5e's
        # 16 MiB default scoped limit.
        budget = 16 * 1024 * 1024
        # 2x double-buffered (in + out) blocks + ~3 f32 working copies.
        bytes_per_row = f_pad * (4 * itemsize + 3 * 4)
        rt = max(sub, budget // bytes_per_row)
        rt = min(rt, 1024)
        # Keep >= ~4 grid steps when the input is large enough so the grid can
        # shard across both TensorCores on v7x.
        rt = min(rt, _round_up(pl.cdiv(rows, 4), sub))
        row_tile = max(sub, (rt // sub) * sub)
    else:
        row_tile = max(sub, _round_up(row_tile, sub))

    rows_pad = _round_up(rows, row_tile)

    x2d = x.reshape(rows, f)
    if rows_pad != rows or f_pad != f:
        x2d = jnp.pad(x2d, ((0, rows_pad - rows), (0, f_pad - f)))

    alpha2d = alpha.reshape(1, f)
    bias2d = bias.reshape(1, f)
    if f_pad != f:
        alpha2d = jnp.pad(alpha2d, ((0, 0), (0, f_pad - f)))
        bias2d = jnp.pad(bias2d, ((0, 0), (0, f_pad - f)))

    kernel = functools.partial(_encoder_norm_kernel, eps=eps, f_valid=f)

    out2d = pl.pallas_call(
        kernel,
        out_shape=jax.ShapeDtypeStruct((rows_pad, f_pad), x.dtype),
        grid_spec=pltpu.PrefetchScalarGridSpec(
            num_scalar_prefetch=0,
            grid=(rows_pad // row_tile,),
            in_specs=[
                pl.BlockSpec((row_tile, f_pad), lambda i: (i, 0)),
                # alpha / bias: full (1, f_pad) array, resident across the grid.
                pl.BlockSpec((1, f_pad), lambda i: (0, 0)),
                pl.BlockSpec((1, f_pad), lambda i: (0, 0)),
            ],
            out_specs=pl.BlockSpec((row_tile, f_pad), lambda i: (i, 0)),
        ),
        compiler_params=pltpu.CompilerParams(
            dimension_semantics=("parallel",),
            vmem_limit_bytes=vmem_limit_bytes,
        ),
    )(x2d, alpha2d, bias2d)

    out2d = out2d[:rows, :f]
    return out2d.reshape(b, s, f)


def _reference(x, alpha, bias, eps=1e-6):
    xf = x.astype(jnp.float32)
    mean = jnp.mean(xf, axis=-1, keepdims=True)
    var = jnp.sum((xf - mean) ** 2, axis=-1, keepdims=True) / (xf.shape[-1] - 1)
    std = jnp.sqrt(var)
    return alpha * (xf - mean) / (std + eps) + bias


if __name__ == "__main__":
    batch, seq, features = 2, 8, 32

    key = jax.random.PRNGKey(0)
    kx, _ = jax.random.split(key)
    x = jax.random.normal(kx, (batch, seq, features), dtype=jnp.float32)
    mask = jnp.ones((batch, 1, seq, seq), dtype=jnp.float32)

    # Deterministic parameter init matching nn.Parameter(torch.ones/zeros(features))
    alpha = jnp.ones((features,), dtype=jnp.float32)
    bias = jnp.zeros((features,), dtype=jnp.float32)

    out = encoder_forward(x, mask, alpha, bias)
    out = jax.block_until_ready(out)

    ref = _reference(x, alpha, bias)
    assert out.shape == (batch, seq, features)
    assert jnp.allclose(out, ref, atol=1e-5, rtol=1e-5)

    # Extra check: non-tile-aligned rows + feature padding path.
    x_odd = jax.random.normal(kx, (3, 5, features), dtype=jnp.float32)
    mask_odd = jnp.ones((3, 1, 5, 5), dtype=jnp.float32)
    out_odd = jax.block_until_ready(encoder_forward(x_odd, mask_odd, alpha, bias))
    assert jnp.allclose(out_odd, _reference(x_odd, alpha, bias), atol=1e-5, rtol=1e-5)

    print("KERNEL_OK")
</pallas_src>

<mosaic_0001>
module attributes {stable_mosaic.version = 11 : i64} {
  func.func @_encoder_norm_kernel(%arg0: i32, %arg1: memref<8x128xf32, #tpu.memory_space<vmem>>, %arg2: memref<1x128xf32, #tpu.memory_space<vmem>>, %arg3: memref<1x128xf32, #tpu.memory_space<vmem>>, %arg4: memref<8x128xf32, #tpu.memory_space<vmem>>) attributes {dimension_semantics = [#tpu.dimension_semantics<parallel>], iteration_bounds = array<i64: 2>, scalar_prefetch = 0 : i64, scratch_operands = 0 : i64, tpu.core_type = #tpu.core_type<tc>, window_params = [{transform_indices = @transform_0, window_bounds = array<i64: 8, 128>}, {pipeline_mode = #tpu.pipeline_mode<synchronous>, transform_indices = @transform_1, window_bounds = array<i64: 1, 128>}, {pipeline_mode = #tpu.pipeline_mode<synchronous>, transform_indices = @transform_2, window_bounds = array<i64: 1, 128>}, {transform_indices = @transform_3, window_bounds = array<i64: 8, 128>}]} {
    %c0 = arith.constant 0 : index
    %c0_0 = arith.constant 0 : index
    %0 = vector.load %arg1[%c0, %c0_0] : memref<8x128xf32, #tpu.memory_space<vmem>>, vector<8x128xf32>
    %cst = arith.constant dense<0.000000e+00> : vector<8xf32>
    %1 = vector.multi_reduction <add>, %0, %cst [1] : vector<8x128xf32> to vector<8xf32>
    %2 = vector.shape_cast %1 : vector<8xf32> to vector<8x1xf32>
    %cst_1 = arith.constant 3.125000e-02 : f32
    %3 = vector.broadcast %cst_1 : f32 to vector<8x1xf32>
    %4 = arith.mulf %2, %3 : vector<8x1xf32>
    %5 = vector.broadcast %4 : vector<8x1xf32> to vector<8x128xf32>
    %6 = arith.subf %0, %5 : vector<8x128xf32>
    %7 = tpu.iota {dimensions = array<i32: 1>} : vector<8x128xi32>
    %c32_i32 = arith.constant 32 : i32
    %8 = vector.broadcast %c32_i32 : i32 to vector<8x128xi32>
    %9 = arith.cmpi slt, %7, %8 : vector<8x128xi32>
    %10 = arith.mulf %6, %6 : vector<8x128xf32>
    %cst_2 = arith.constant 0.000000e+00 : f32
    %11 = vector.broadcast %cst_2 : f32 to vector<8x128xf32>
    %12 = arith.select %9, %10, %11 : vector<8x128xi1>, vector<8x128xf32>
    %cst_3 = arith.constant dense<0.000000e+00> : vector<8xf32>
    %13 = vector.multi_reduction <add>, %12, %cst_3 [1] : vector<8x128xf32> to vector<8xf32>
    %14 = vector.shape_cast %13 : vector<8xf32> to vector<8x1xf32>
    %cst_4 = arith.constant 0.0322580636 : f32
    %15 = vector.broadcast %cst_4 : f32 to vector<8x1xf32>
    %16 = arith.mulf %14, %15 : vector<8x1xf32>
    %17 = math.sqrt %16 : vector<8x1xf32>
    %cst_5 = arith.constant 9.99999997E-7 : f32
    %18 = vector.broadcast %cst_5 : f32 to vector<8x1xf32>
    %19 = arith.addf %17, %18 : vector<8x1xf32>
    %20 = tpu.reciprocal %19 : vector<8x1xf32> -> vector<8x1xf32>
    %c0_6 = arith.constant 0 : index
    %c0_7 = arith.constant 0 : index
    %21 = vector.load %arg2[%c0_6, %c0_7] : memref<1x128xf32, #tpu.memory_space<vmem>>, vector<1x128xf32>
    %c0_8 = arith.constant 0 : index
    %c0_9 = arith.constant 0 : index
    %22 = vector.load %arg3[%c0_8, %c0_9] : memref<1x128xf32, #tpu.memory_space<vmem>>, vector<1x128xf32>
    %23 = vector.broadcast %21 : vector<1x128xf32> to vector<8x128xf32>
    %24 = vector.broadcast %20 : vector<8x1xf32> to vector<8x128xf32>
    %25 = arith.mulf %23, %24 : vector<8x128xf32>
    %26 = arith.mulf %6, %25 : vector<8x128xf32>
    %27 = vector.broadcast %22 : vector<1x128xf32> to vector<8x128xf32>
    %28 = arith.addf %26, %27 : vector<8x128xf32>
    %c0_10 = arith.constant 0 : index
    %c0_11 = arith.constant 0 : index
    %29 = vector.load %arg4[%c0_10, %c0_11] : memref<8x128xf32, #tpu.memory_space<vmem>>, vector<8x128xf32>
    tpu.vector_store %arg4[%c0_10, %c0_11], %28 {strides = array<i32>} : memref<8x128xf32, #tpu.memory_space<vmem>>, vector<8x128xf32>,
    return
  }
  func.func @transform_0(%arg0: i32) -> (i32, i32) {
    %c0_i32 = arith.constant 0 : i32
    %c0_i32_0 = arith.constant 0 : i32
    return %arg0, %c0_i32 : i32, i32
  }
  func.func @transform_1(%arg0: i32) -> (i32, i32) {
    %c0_i32 = arith.constant 0 : i32
    %c0_i32_0 = arith.constant 0 : i32
    %c0_i32_1 = arith.constant 0 : i32
    return %c0_i32, %c0_i32_0 : i32, i32
  }
  func.func @transform_2(%arg0: i32) -> (i32, i32) {
    %c0_i32 = arith.constant 0 : i32
    %c0_i32_0 = arith.constant 0 : i32
    %c0_i32_1 = arith.constant 0 : i32
    return %c0_i32, %c0_i32_0 : i32, i32
  }
  func.func @transform_3(%arg0: i32) -> (i32, i32) {
    %c0_i32 = arith.constant 0 : i32
    %c0_i32_0 = arith.constant 0 : i32
    return %arg0, %c0_i32 : i32, i32
  }
}

</mosaic_0001>

<bundles_post_ra>
// kernel: tpu_custom_call.1
= control target key start
LH: loop header
LB: loop body
LE: loop exit
PB: predicated region body
PF: predicated region fallthrough
CT: control target
= control target key end

     0   :  { %8 = vsyncpa [#allocation3], 0  ;;  %s726_s0 = inlined_call_operand.hbm [shape: f32[16,128], index: 0, kind: input, shape index: {}]   ;;  %s727_s1 = inlined_call_operand.hbm [shape: f32[1,128], index: 1, kind: input, shape index: {}]   ;;  %s728_s2 = inlined_call_operand.vmem [shape: f32[1,128], index: 2, kind: input, shape index: {}]   ;;  %s729_s3 = inlined_call_operand.hbm [shape: f32[16,128], index: 3, kind: output, shape index: {}]  }
   0x1   :  { %10 = vsyncpa [#allocation3 + $0x1], 0 }
   0x2   :  { %11 = vsyncpa [#allocation6], 0 }
   0x3   :  { %12 = vsyncpa [#allocation4], 0 }
   0x4   :  { %14 = vsyncpa [#allocation4 + $0x1], 0  ;;  %s581_s12 = smov 0   ;;  %s583_s13 = smov 0  }
   0x5   :  { %s585_s14 = smov 0   ;;  %s587_s15 = smov 0  }
   0x6 LB: > { %s602_s16 = sadd.s32 4294967295, %s558_s15   ;;  %s351_s17 = sadd.s32 4294967294, %s558_s15   ;;  %s558_s15 = sphi %s587_s15, %s739_s15   ;;  %s554_s14 = sphi %s585_s14, %s738_s14   ;;  %s550_s13 = sphi %s583_s13, %s737_s13   ;;  %s546_s12 = sphi %s581_s12, %s736_s12  }
   0x7   : > { %p40_p0 = scmp.ne.s32.totalorder %s550_s13, %s546_s12  ;;  %p41_p1 = scmp.eq.s32.totalorder %s602_s16, 0 }
   0x8   : > { %p106_p2 = scmp.eq.s32.totalorder %s602_s16, 1  ;;  %p112_p3 = scmp.eq.s32.totalorder %s351_s17, 1 }
   0x9   : > { %p611_p4 = por %p41_p1, %p40_p0  ;;  %p352_p5 = scmp.ge.s32.totalorder %s558_s15, 1 }
   0xa   : > { %p616_p6 = por %p112_p3, %p40_p0  ;;  %p119_p7 = scmp.lt.s32.totalorder %s558_s15, 3 }
   0xb   : > { %s131_s22 = sshll.u32 %s727_s1, 4  ;;  %s560_s24 = smov [#allocation5]   ;;  %s132_s22 = int_to_ptr.hbm [resolvable:$true] %s131_s22 }
   0xc   : > { %p624_p8 = pnand %p352_p5, %p119_p7  ;;  %s133_s25 = sshll.u32 %s560_s24, 4  ;;  %s134_s25 = int_to_ptr.vmem [resolvable:$true] %s133_s25 }
   0xd   : > { %s634_s26 = sadd.s32 1, %s558_s15   ;;  %s27_s27 = sadd.s32 1, %s554_s14 }
   0xe   : > { %p373_p10 = pneg %p624_p8  ;;  %s24_s28 = ssub.s32 %s558_s15, %s634_s26 }
   0xf   : > { %p25_p12 = scmp.eq.s32.totalorder %s24_s28, 0  ;;  %p34_p13 = scmp.ne.s32.totalorder %s554_s14, %s550_s13 }
  0x10   : > { %p374_p11 = pnand %p373_p10, %p41_p1  ;;  %p35_p0 = scmp.eq.s32.totalorder %s558_s15, 0 }
  0x11   : > { %s643_s29 = scalar_select %p25_p12, %s554_s14, %s27_s27  }
  0x12   : > { %376 = dma.hbm_to_vmem [thread:$0]  (!%p374_p11), %s132_s22, 16, %s134_s25, [#allocation6]  }
  0x13   : > { %p647_p3 = por %p106_p2, %p34_p13  ;;  %p386_p5 = scmp.lt.s32.totalorder %s558_s15, 2 }
  0x14   : > { %s147_s4 = sand.u32 1, %s554_s14   ;;  %s356_s5 = sshll.u32 %s558_s15, 3 }
  0x15   : > { %p36_p7 = por %p35_p0, %p34_p13  ;;  %s355_s6 = sshll.u32 %s147_s4, 3 }
  0x16   : > { %s155_s9 = scalar_lea.hbm %s726_s0, %s356_s5  ;;  %s151_s11 = scalar_lea.vmem [#allocation2], %s355_s6 }
  0x17   : > { %s157_s10 = sshll.u32 %s155_s9, 4  ;;  %s159_s17 = sshll.u32 %s151_s11, 4  ;;  %s158_s10 = int_to_ptr.hbm [resolvable:$true] %s157_s10  ;;  %s160_s17 = int_to_ptr.vmem [resolvable:$true] %s159_s17 }
  0x18   : > { %p657_p10 = pnand %p386_p5, %p36_p7  ;;  %s148_s21 = scalar_lea.sflag [#allocation3], %s147_s4 }
  0x19   : > { %s458_s22 = sshra.s32 %s158_s10, 4  ;;  %s465_s28 = scalar_lea.hbm %s726_s0, 16  ;;  %s459_s22 = int_to_ptr.hbm [resolvable:$true] %s458_s22 }
  0x1a   : > { %s460_s24 = scalar_lea.hbm %s459_s22, 8  ;;  %p462_p11 = pneg %p657_p10 }
  0x1b   : > { %p461_p2 = scmp.ne.s32.totalorder %s459_s22, %s460_s24  ;;  %p466_p0 = scmp.lt.s32.totalorder %s459_s22, %s726_s0 }
  0x1c   : > { %p467_p5 = scmp.lt.s32.totalorder %s465_s28, %s460_s24 }
  0x1d   : > { %p463_p12 = pnand %p462_p11, %p461_p2 }
  0x1e   : > { %p468_p7 = por %p467_p5, %p466_p0 }
  0x1f   : > { %p464_p13 = pneg %p463_p12 }
  0x21   : > { %p469_p9 = pnand %p468_p7, %p464_p13 }
  0x23   : > { %472 = shalt.err (!%p469_p9)
}
  0x24   : > { %380 = dma.hbm_to_vmem [thread:$0]  (!%p657_p10), %s158_s10, 128, %s160_s17, %s148_s21  }
  0x25   : > { %168 = sbr.rel (%p624_p8) target bundleno = 336 (0x150), region = 32  ;;  %s674_s4 = sand.u32 (!%p624_p8), 1, %s550_s13  }
  0x26   : > { %s358_s7 = sshll.u32 (!%p624_p8), %s674_s4, 3  ;;  %s171_s8 = scalar_lea.sflag (!%p624_p8), [#allocation3], %s674_s4 }
  0x27   : > { %s174_s9 = scalar_lea.vmem (!%p624_p8), [#allocation2], %s358_s7 }
  0x2a   : > { %533 = dma.done.wait (%p611_p4), %s171_s8, 128  }
  0x2b   : > { %535 = vsyncadd (%p611_p4), %s171_s8, 4294967168 }
  0x2c   : > { %537 = dma.done.wait (%p41_p1), [#allocation6], 16  }
  0x2d   : > { %539 = vsyncadd (%p41_p1), [#allocation6], 4294967280  ;;  %v203_v0 = vld [vmem:[%s174_s9] sm:$0xff]  ;;  %v208_v1 = vlaneseq  ;;  %s362_s18 = sshll.u32 %s602_s16, 3  ;;  %v422_v28 = vld [vmem:[#allocation5] ss:$0 sm:$0xff] }
  0x2e   : > { %204 = vadd.xlane.f32.xlu0 %v203_v0  ;;  %s266_s11 = scalar_lea.hbm %s729_s3, %s362_s18  ;;  %v423_v33 = vld [vmem:[%s728_s2] ss:$0 sm:$0xff]  ;;  %s202_s16 = scalar_lea.vmem [#allocation7], %s358_s7 }
  0x2f   : > { %v209_v3 = vand.u32 127, %v208_v1  ;;  %s268_s21 = sshll.u32 %s202_s16, 4  ;;  %s270_s22 = sshll.u32 %s266_s11, 4  ;;  %s269_s21 = int_to_ptr.vmem [resolvable:$true] %s268_s21  ;;  %s271_s22 = int_to_ptr.hbm [resolvable:$true] %s270_s22 }
  0x30   : > { %s256_s24 = scalar_lea.sflag [#allocation4], %s674_s4  ;;  %s502_s25 = sshra.s32 %s271_s22, 4  ;;  %s503_s25 = int_to_ptr.hbm [resolvable:$true] %s502_s25 }
  0x31   : > { %vm210_vm0 = vcmp.lt.s32.totalorder %v209_v3, 32  ;;  %s504_s27 = scalar_lea.hbm %s503_s25, 8  ;;  %s508_s6 = scalar_lea.hbm %s729_s3, 16 }
  0x32   : > { %p505_p1 = scmp.ne.s32.totalorder %s503_s25, %s504_s27  ;;  %p509_p9 = scmp.lt.s32.totalorder %s503_s25, %s729_s3 }
  0x33   : > { %p510_p10 = scmp.lt.s32.totalorder %s508_s6, %s504_s27 }
  0x34   : > { %p506_p4 = pnand %p505_p1, %p647_p3 }
  0x35   : > { %p511_p2 = por %p510_p10, %p509_p9 }
  0x36   : > { %p507_p8 = pneg %p506_p4 }
  0x38   : > { %p512_p11 = pnand %p511_p2, %p507_p8 }
  0xa1   : > { %v205_v2 = vpop.xlane.xlu0 %204 }
  0xa2   : > { %v206_v4 = vmul.f32 0.03125, %v205_v2 }
  0xa4   : > { %v207_v5 = vsub.f32 %v203_v0, %v206_v4 }
  0xa6   : > { %v211_v6 = vmul.f32 %v207_v5, %v207_v5 }
  0xa8   : > { %v212_v7 = vsel %vm210_vm0, %v211_v6, 0.0 }
  0xa9   : > { %213 = vadd.xlane.f32.xlu0 %v212_v7 }
 0x11c   : > { %v214_v8 = vpop.xlane.xlu0 %213 }
 0x11d   : > { %v215_v9 = vmul.f32 0.032258064, %v214_v8 }
 0x11f   : > { %424 = vrsqrt.f32 %v215_v9  ;;  %vm223_vm1 = vcmp.eq.f32.partialorder %v215_v9, inf  ;;  %v226_v17 = vand.u32 2147483648, %v215_v9  ;;  %vm225_vm2 = vcmp.eq.f32.partialorder %v215_v9, 0.0 }
 0x125   : > { %v425_v10 = vpop.eup %424 }
 0x126   : > { %v217_v11 = vmul.f32 %v425_v10, %v215_v9 }
 0x128   : > { %v218_v12 = vmul.f32 %v425_v10, %v217_v11 }
 0x12a   : > { %v219_v13 = vmul.f32 0.5, %v218_v12 }
 0x12c   : > { %v220_v14 = vsub.f32 1.5, %v219_v13 }
 0x12e   : > { %v221_v15 = vmul.f32 %v425_v10, %v220_v14 }
 0x130   : > { %v222_v16 = vmul.f32 %v221_v15, %v215_v9 }
 0x132   : > { %v224_v18 = vsel %vm223_vm1, %v215_v9, %v222_v16 }
 0x133   : > { %v227_v19 = vsel %vm225_vm2, %v226_v17, %v224_v18 }
 0x134   : > { %v228_v20 = vadd.f32 1e-06, %v227_v19 }
 0x136   : > { %426 = vrcp.f32 %v228_v20  ;;  %v240_v24 = vand.u32 2147483648, %v228_v20  ;;  %v238_v26 = vand.u32 2147483647, %v228_v20  ;;  %vm234_vm4 = vweird.f32 %v228_v20 }
 0x138   : > { %v241_v29 = vor.u32 1.1754944e-38, %v240_v24  ;;  %vm239_vm6 = vcmp.eq.f32.partialorder %v238_v26, 8.507059e+37 }
 0x13c   : > { %v427_v21 = vpop.eup %426 }
 0x13d   : > { %v230_v22 = vmul.f32 %v427_v21, %v228_v20  ;;  %vm235_vm3 = vweird.f32 %v427_v21 }
 0x13e   : > { %vm236_vm5 = vmor %vm234_vm4, %vm235_vm3 }
 0x13f   : > { %v231_v23 = vsub.f32 1.0, %v230_v22 }
 0x141   : > { %v232_v25 = vmul.f32 %v427_v21, %v231_v23 }
 0x143   : > { %v233_v27 = vadd.f32 %v427_v21, %v232_v25 }
 0x145   : > { %v237_v30 = vsel %vm236_vm5, %v427_v21, %v233_v27 }
 0x146   : > { %v242_v31 = vsel %vm239_vm6, %v241_v29, %v237_v30 }
 0x147   : > { %v248_v32 = vmul.f32 %v422_v28, %v242_v31 }
 0x149   : > { %v249_v34 = vmul.f32 %v248_v32, %v207_v5 }
 0x14b   : > { %v253_v35 = vadd.f32 %v423_v33, %v249_v34 }
 0x14d   : > { %254 = vst [vmem:[%s202_s16] sm:$0xff] %v253_v35 }
 0x14e   : > { %515 = shalt.err (!%p512_p11)
}
 0x14f   : > { %371 = dma.vmem_to_hbm [thread:$0]  (%p647_p3), %s269_s21, 128, %s271_s22, %s256_s24  }
 0x150 PF: > { %s282_s4 = sand.u32 1, %s546_s12   ;;  %p735_p12 = scmp.ge.s32.totalorder %s558_s15, 2 }
 0x151   : > { %s283_s9 = scalar_lea.sflag [#allocation4], %s282_s4 }
 0x152   : > { %p382_p13 = pnand %p735_p12, %p616_p6 }
 0x154   : > { %p383_p0 = pneg %p382_p13 }
 0x156   : > { %541 = dma.done.wait (%p383_p0), %s283_s9, 128  }
 0x157   : > { %543 = vsyncadd (%p383_p0), %s283_s9, 4294967168  ;;  %p17_p5 = scmp.ge.s32.totalorder %s634_s26, 4   ;;  %s736_s12 = smov %s550_s13 }
 0x158   : > { %s737_s13 = smov %s554_s14  ;;  %s738_s14 = smov %s643_s29 }
 0x159   : > { %s739_s15 = smov %s634_s26  ;;  %19 = sbr.rel (!%p17_p5) target bundleno = 6 (0x6), region = 81 }
 0x15e   :  { %289 = vsyncpa [#allocation3], 1 }
 0x15f   :  { %291 = vsyncpa [#allocation3 + $0x1], 1 }
 0x160   :  { %292 = vsyncpa [#allocation6], 1 }
 0x161   :  { %293 = vsyncpa [#allocation4], 1 }
 0x162   :  { %295 = vsyncpa [#allocation4 + $0x1], 1 }

</bundles_post_ra>
